<compile_context>
chip_gen: v5e
topology: v5e:2x2
jax: 0.10.0
libtpu: 0.0.40
codegen_flags: <defaults>
</compile_context>

<pallas_src>
import math

import jax
import jax.numpy as jnp
from jax import lax
from jax.experimental import pallas as pl
from jax.experimental.pallas import tpu as pltpu


def _ap_attention_kernel(params_ref, kstats_ref, q_ref, kcol_ref, vw_ref,
                         o_ref, acc_ref):
    """One (batch bi, query-tile qi, key-chunk ki) grid step.

    params_ref : SMEM f32[8]    packed [w_q, w_k, w_v, b_q, b_k, b_v, w_o, b_o]
    kstats_ref : SMEM f32[2*B]  interleaved per-batch [k_max, k_min] of the
                                affine-transformed *valid* keys (wrapper prep).
    q_ref      : VMEM (1, TQ)   raw query tile, lane-major.
    kcol_ref   : VMEM (KT, 1)   affine-transformed key chunk (column).
    vw_ref     : VMEM (2, KT)   stacked [v*mask ; mask] chunk, lane-major.
    o_ref      : VMEM (1, TQ)   output tile.
    acc_ref    : VMEM (2, TQ)   f32 scratch accumulating [num ; den] over ki.
    """
    bi = pl.program_id(0)
    ki = pl.program_id(2)

    @pl.when(ki == 0)
    def _init():
        acc_ref[...] = jnp.zeros_like(acc_ref)

    w_q = params_ref[0]
    b_q = params_ref[3]
    k_max = kstats_ref[2 * bi]
    k_min = kstats_ref[2 * bi + 1]

    # in-projection of the query tile (embed_dim == 1 -> scalar affine);
    # MHA scaling = 1/sqrt(head_dim) = 1.
    q = q_ref[...] * w_q + b_q                      # (1, TQ)

    # analytic per-query softmax shift: exact max_j(q_i * k_j) over valid keys
    # (scores are rank-1 because head_dim == 1).  Identical for every ki, so
    # the chunked accumulation needs no online-softmax rescaling.
    m = jnp.maximum(q * k_max, q * k_min)           # (1, TQ)

    # scores for this key chunk: rank-1 outer product (VPU broadcast fma),
    # then the O(KT*TQ) exp on the EUP.  The minimum(..., 0) clamp is a no-op
    # for valid keys and prevents padded keys from overflowing exp().
    s = jnp.minimum(kcol_ref[...] * q - m, 0.0)     # (KT, TQ)
    e = jnp.exp(s)                                  # (KT, TQ), in [0, 1]

    # fused masked row-sums: a single (2, KT) @ (KT, TQ) MXU matmul (bf16
    # inputs, f32 accumulation) yields this chunk's [num ; den] in one pass
    # over e, accumulated across key chunks in VMEM scratch.
    acc_ref[...] += lax.dot_general(
        vw_ref[...].astype(jnp.bfloat16),
        e.astype(jnp.bfloat16),
        dimension_numbers=(((1,), (0,)), ((), ())),
        preferred_element_type=jnp.float32)

    @pl.when(ki == pl.num_programs(2) - 1)
    def _finalize():
        num = acc_ref[0:1, :]
        den = acc_ref[1:2, :]
        inv = pl.reciprocal(den, approx=True)
        inv = inv * (2.0 - den * inv)               # one Newton step
        w_o = params_ref[6]
        b_o = params_ref[7]
        # out-projection (Linear(1, 1)) on the lane-dense output row.
        o_ref[...] = (num * inv * w_o + b_o).astype(o_ref.dtype)


def ap_attention(x_query, x_key, params):
    """x_query, x_key: (B, L, 1) float32.  params: f32[8] packed MHA weights."""
    assert x_query.ndim == 3 and x_query.shape[-1] == 1
    assert x_query.shape == x_key.shape  # value = x_query, so L_k must equal L_q
    B, L, _ = x_query.shape

    params = params.astype(jnp.float32)
    xq = x_query[..., 0].astype(jnp.float32)        # (B, L)
    xk = x_key[..., 0].astype(jnp.float32)          # (B, L)

    LANE = 128
    l_pad = ((L + LANE - 1) // LANE) * LANE
    # tile = query-tile width == key-chunk length; largest multiple of 128 that
    # divides the padded length, capped at 512 so the per-chunk (KT, TQ) exp
    # working set stays ~1 MiB regardless of L.
    tile = math.gcd(l_pad, 512)
    pad = l_pad - L

    # ---- per-batch prep (one fused O(B*L) XLA pass), hoisted out of the -----
    # ---- kernel's O(L^2/tile) query-tile loop per the perf review.      -----
    w_k, w_v = params[1], params[2]
    b_k, b_v = params[4], params[5]

    k_aff = xk * w_k + b_k                          # (B, L) affined keys
    k_max = jnp.max(k_aff, axis=1)                  # (B,)  over valid keys only
    k_min = jnp.min(k_aff, axis=1)                  # (B,)
    kstats = jnp.stack([k_max, k_min], axis=1).reshape(-1)   # (2B,) interleaved

    v_aff = xq * w_v + b_v                          # (B, L) affined values (= x_query)
    ones = jnp.ones((B, L), jnp.float32)
    vw = jnp.stack([v_aff, ones], axis=1)           # (B, 2, L): [v*mask ; mask]
    vw = jnp.pad(vw, ((0, 0), (0, 0), (0, pad)))    # zero pad == masked tail

    k_col = jnp.pad(k_aff, ((0, 0), (0, pad)))[:, :, None]    # (B, L_pad, 1)
    q_rows = jnp.pad(xq, ((0, 0), (0, pad)))[:, None, :]      # (B, 1, L_pad)

    n_q = l_pad // tile
    n_k = l_pad // tile
    grid = (B, n_q, n_k)

    out = pl.pallas_call(
        _ap_attention_kernel,
        out_shape=jax.ShapeDtypeStruct((B, 1, l_pad), jnp.float32),
        grid=grid,
        in_specs=[
            pl.BlockSpec(memory_space=pltpu.MemorySpace.SMEM),            # params
            pl.BlockSpec(memory_space=pltpu.MemorySpace.SMEM),            # kstats
            pl.BlockSpec((None, 1, tile), lambda bi, qi, ki: (bi, 0, qi)),   # q tile
            pl.BlockSpec((None, tile, 1), lambda bi, qi, ki: (bi, ki, 0)),   # key chunk
            pl.BlockSpec((None, 2, tile), lambda bi, qi, ki: (bi, 0, ki)),   # [v*mask; mask]
        ],
        out_specs=pl.BlockSpec((None, 1, tile), lambda bi, qi, ki: (bi, 0, qi)),
        scratch_shapes=[pltpu.VMEM((2, tile), jnp.float32)],
        compiler_params=pltpu.CompilerParams(
            dimension_semantics=("parallel", "parallel", "arbitrary"),
            vmem_limit_bytes=32 * 1024 * 1024),
    )(params, kstats, q_rows, k_col, vw)

    return out[:, 0, :L, None]                      # (B, L, 1)


def ref_ap_attention(x_query, x_key, params):
    """Pure-JAX reference mirroring nn.MultiheadAttention(E=1, H=1) in exact f32."""
    w_q, w_k, w_v, b_q, b_k, b_v, w_o, b_o = [params[i] for i in range(8)]
    q = x_query[..., 0] * w_q + b_q                 # (B, L)
    k = x_key[..., 0] * w_k + b_k
    v = x_query[..., 0] * w_v + b_v
    scores = q[:, :, None] * k[:, None, :]          # (B, L, L); scale = 1/sqrt(1)
    attn = jax.nn.softmax(scores, axis=-1)
    out = jnp.sum(attn * v[:, None, :], axis=-1)    # (B, L)
    return (out * w_o + b_o)[..., None]             # (B, L, 1)


if __name__ == "__main__":
    # Deterministic synthetic MHA parameters (in_proj_weight (3,1), in_proj_bias
    # (3,), out_proj.weight (1,1), out_proj.bias (1,)) packed as
    # [w_q, w_k, w_v, b_q, b_k, b_v, w_o, b_o].
    params = jnp.array([0.7, -0.4, 1.3, 0.1, -0.2, 0.05, 0.9, 0.03],
                       dtype=jnp.float32)

    B, L = 2, 16
    key = jax.random.PRNGKey(0)
    k1, k2 = jax.random.split(key)
    x_query = jax.random.normal(k1, (B, L, 1), dtype=jnp.float32)
    x_key = jax.random.normal(k2, (B, L, 1), dtype=jnp.float32)

    out = ap_attention(x_query, x_key, params)
    out = jax.block_until_ready(out)

    ref = ref_ap_attention(x_query, x_key, params)
    assert out.shape == (B, L, 1)
    err = float(jnp.max(jnp.abs(out - ref)))
    # Tolerance covers the bf16 MXU inputs of the fused num/den matmul
    # (f32 accumulation); observed error is typically a few 1e-3 or less.
    assert err < 2e-2, f"max abs err {err}"

    print("KERNEL_OK")
</pallas_src>

<mosaic_0001>
module attributes {stable_mosaic.version = 11 : i64} {
  func.func @_ap_attention_kernel(%arg0: i32, %arg1: i32, %arg2: i32, %arg3: memref<8xf32, #tpu.memory_space<smem>>, %arg4: memref<4xf32, #tpu.memory_space<smem>>, %arg5: memref<1x1x128xf32, #tpu.memory_space<vmem>>, %arg6: memref<1x128x1xf32, #tpu.memory_space<vmem>>, %arg7: memref<1x2x128xf32, #tpu.memory_space<vmem>>, %arg8: memref<1x1x128xf32, #tpu.memory_space<vmem>>, %arg9: memref<2x128xf32, #tpu.memory_space<vmem>>) attributes {dimension_semantics = [#tpu.dimension_semantics<parallel>, #tpu.dimension_semantics<parallel>, #tpu.dimension_semantics<arbitrary>], iteration_bounds = array<i64: 2, 1, 1>, scalar_prefetch = 0 : i64, scratch_operands = 1 : i64, tpu.core_type = #tpu.core_type<tc>, window_params = [{transform_indices = @transform_0, window_bounds = array<i64: 8>}, {transform_indices = @transform_1, window_bounds = array<i64: 4>}, {transform_indices = @transform_2, window_bounds = array<i64: 1, 1, 128>}, {transform_indices = @transform_3, window_bounds = array<i64: 1, 128, 1>}, {transform_indices = @transform_4, window_bounds = array<i64: 1, 2, 128>}, {transform_indices = @transform_5, window_bounds = array<i64: 1, 1, 128>}]} {
    %c0_i32 = arith.constant 0 : i32
    %0 = arith.cmpi eq, %arg2, %c0_i32 : i32
    %1 = arith.extui %0 : i1 to i32
    %c0_i32_0 = arith.constant 0 : i32
    %2 = arith.cmpi ne, %1, %c0_i32_0 : i32
    scf.if %2 {
      %cst_18 = arith.constant 0.000000e+00 : f32
      %44 = vector.broadcast %cst_18 : f32 to vector<2x128xf32>
      %c0_19 = arith.constant 0 : index
      %c0_20 = arith.constant 0 : index
      %45 = vector.load %arg9[%c0_19, %c0_20] : memref<2x128xf32, #tpu.memory_space<vmem>>, vector<2x128xf32>
      tpu.vector_store %arg9[%c0_19, %c0_20], %44 {strides = array<i32>} : memref<2x128xf32, #tpu.memory_space<vmem>>, vector<2x128xf32>,
    } else {
    }
    %c0 = arith.constant 0 : index
    %3 = memref.load %arg3[%c0] : memref<8xf32, #tpu.memory_space<smem>>
    %c3 = arith.constant 3 : index
    %4 = memref.load %arg3[%c3] : memref<8xf32, #tpu.memory_space<smem>>
    %c2_i32 = arith.constant 2 : i32
    %5 = arith.muli %c2_i32, %arg0 : i32
    %6 = arith.index_cast %5 : i32 to index
    %7 = memref.load %arg4[%6] : memref<4xf32, #tpu.memory_space<smem>>
    %c2_i32_1 = arith.constant 2 : i32
    %8 = arith.muli %c2_i32_1, %arg0 : i32
    %c1_i32 = arith.constant 1 : i32
    %9 = arith.addi %8, %c1_i32 : i32
    %10 = arith.index_cast %9 : i32 to index
    %11 = memref.load %arg4[%10] : memref<4xf32, #tpu.memory_space<smem>>
    %c0_2 = arith.constant 0 : index
    %c0_3 = arith.constant 0 : index
    %c0_4 = arith.constant 0 : index
    %12 = vector.load %arg5[%c0_2, %c0_3, %c0_4] : memref<1x1x128xf32, #tpu.memory_space<vmem>>, vector<1x1x128xf32>
    %13 = vector.shape_cast %12 : vector<1x1x128xf32> to vector<1x128xf32>
    %14 = vector.broadcast %3 : f32 to vector<1x128xf32>
    %15 = arith.mulf %13, %14 : vector<1x128xf32>
    %16 = vector.broadcast %4 : f32 to vector<1x128xf32>
    %17 = arith.addf %15, %16 : vector<1x128xf32>
    %18 = vector.broadcast %7 : f32 to vector<1x128xf32>
    %19 = arith.mulf %17, %18 : vector<1x128xf32>
    %20 = vector.broadcast %11 : f32 to vector<1x128xf32>
    %21 = arith.mulf %17, %20 : vector<1x128xf32>
    %22 = arith.maximumf %19, %21 : vector<1x128xf32>
    %c0_5 = arith.constant 0 : index
    %c0_6 = arith.constant 0 : index
    %c0_7 = arith.constant 0 : index
    %23 = vector.load %arg6[%c0_5, %c0_6, %c0_7] : memref<1x128x1xf32, #tpu.memory_space<vmem>>, vector<1x128x1xf32>
    %24 = vector.shape_cast %23 : vector<1x128x1xf32> to vector<128x1xf32>
    %25 = vector.broadcast %24 : vector<128x1xf32> to vector<128x128xf32>
    %26 = vector.broadcast %17 : vector<1x128xf32> to vector<128x128xf32>
    %27 = arith.mulf %25, %26 : vector<128x128xf32>
    %28 = vector.broadcast %22 : vector<1x128xf32> to vector<128x128xf32>
    %29 = arith.subf %27, %28 : vector<128x128xf32>
    %cst = arith.constant 0.000000e+00 : f32
    %30 = vector.broadcast %cst : f32 to vector<128x128xf32>
    %31 = arith.minimumf %29, %30 : vector<128x128xf32>
    %32 = math.exp %31 : vector<128x128xf32>
    %c0_8 = arith.constant 0 : index
    %c0_9 = arith.constant 0 : index
    %33 = vector.load %arg9[%c0_8, %c0_9] : memref<2x128xf32, #tpu.memory_space<vmem>>, vector<2x128xf32>
    %c0_10 = arith.constant 0 : index
    %c0_11 = arith.constant 0 : index
    %c0_12 = arith.constant 0 : index
    %34 = vector.load %arg7[%c0_10, %c0_11, %c0_12] : memref<1x2x128xf32, #tpu.memory_space<vmem>>, vector<1x2x128xf32>
    %35 = vector.shape_cast %34 : vector<1x2x128xf32> to vector<2x128xf32>
    %36 = arith.truncf %35 : vector<2x128xf32> to vector<2x128xbf16>
    %37 = arith.truncf %32 : vector<128x128xf32> to vector<128x128xbf16>
    %cst_13 = arith.constant dense<0.000000e+00> : vector<2x128xf32>
    %38 = tpu.matmul %36, %37, %cst_13 {dimension_numbers = #tpu.dot_dimension_numbers<[1], [0], [0], [1], [0, 0, 1, 1], [], []>} : vector<2x128xbf16>, vector<128x128xbf16>, vector<2x128xf32> -> vector<2x128xf32>
    %39 = arith.addf %33, %38 : vector<2x128xf32>
    %c0_14 = arith.constant 0 : index
    %c0_15 = arith.constant 0 : index
    %40 = vector.load %arg9[%c0_14, %c0_15] : memref<2x128xf32, #tpu.memory_space<vmem>>, vector<2x128xf32>
    tpu.vector_store %arg9[%c0_14, %c0_15], %39 {strides = array<i32>} : memref<2x128xf32, #tpu.memory_space<vmem>>, vector<2x128xf32>,
    %c0_i32_16 = arith.constant 0 : i32
    %41 = arith.cmpi eq, %arg2, %c0_i32_16 : i32
    %42 = arith.extui %41 : i1 to i32
    %c0_i32_17 = arith.constant 0 : i32
    %43 = arith.cmpi ne, %42, %c0_i32_17 : i32
    scf.if %43 {
      %c0_18 = arith.constant 0 : index
      %c0_19 = arith.constant 0 : index
      %44 = vector.load %arg9[%c0_18, %c0_19] : memref<2x128xf32, #tpu.memory_space<vmem>>, vector<1x128xf32>
      %c1 = arith.constant 1 : index
      %c0_20 = arith.constant 0 : index
      %45 = vector.load %arg9[%c1, %c0_20] : memref<2x128xf32, #tpu.memory_space<vmem>>, vector<1x128xf32>
      %46 = tpu.reciprocal %45 {approx = true} : vector<1x128xf32> -> vector<1x128xf32>
      %47 = arith.mulf %45, %46 : vector<1x128xf32>
      %cst_21 = arith.constant 2.000000e+00 : f32
      %48 = vector.broadcast %cst_21 : f32 to vector<1x128xf32>
      %49 = arith.subf %48, %47 : vector<1x128xf32>
      %50 = arith.mulf %46, %49 : vector<1x128xf32>
      %c6 = arith.constant 6 : index
      %51 = memref.load %arg3[%c6] : memref<8xf32, #tpu.memory_space<smem>>
      %c7 = arith.constant 7 : index
      %52 = memref.load %arg3[%c7] : memref<8xf32, #tpu.memory_space<smem>>
      %53 = arith.mulf %44, %50 : vector<1x128xf32>
      %54 = vector.broadcast %51 : f32 to vector<1x128xf32>
      %55 = arith.mulf %53, %54 : vector<1x128xf32>
      %56 = vector.broadcast %52 : f32 to vector<1x128xf32>
      %57 = arith.addf %55, %56 : vector<1x128xf32>
      %c0_22 = arith.constant 0 : index
      %c0_23 = arith.constant 0 : index
      %c0_24 = arith.constant 0 : index
      %58 = vector.load %arg8[%c0_22, %c0_23, %c0_24] : memref<1x1x128xf32, #tpu.memory_space<vmem>>, vector<1x1x128xf32>
      %59 = vector.shape_cast %58 : vector<1x1x128xf32> to vector<1x128xf32>
      %60 = vector.shape_cast %57 : vector<1x128xf32> to vector<1x1x128xf32>
      tpu.vector_store %arg8[%c0_22, %c0_23, %c0_24], %60 {strides = array<i32>} : memref<1x1x128xf32, #tpu.memory_space<vmem>>, vector<1x1x128xf32>,
    } else {
    }
    return
  }
  func.func @transform_0(%arg0: i32, %arg1: i32, %arg2: i32) -> i32 {
    %c0_i32 = arith.constant 0 : i32
    %c0_i32_0 = arith.constant 0 : i32
    return %c0_i32 : i32
  }
  func.func @transform_1(%arg0: i32, %arg1: i32, %arg2: i32) -> i32 {
    %c0_i32 = arith.constant 0 : i32
    %c0_i32_0 = arith.constant 0 : i32
    return %c0_i32 : i32
  }
  func.func @transform_2(%arg0: i32, %arg1: i32, %arg2: i32) -> (i32, i32, i32) {
    %c0_i32 = arith.constant 0 : i32
    %c0_i32_0 = arith.constant 0 : i32
    return %arg0, %c0_i32, %arg1 : i32, i32, i32
  }
  func.func @transform_3(%arg0: i32, %arg1: i32, %arg2: i32) -> (i32, i32, i32) {
    %c0_i32 = arith.constant 0 : i32
    %c0_i32_0 = arith.constant 0 : i32
    return %arg0, %arg2, %c0_i32 : i32, i32, i32
  }
  func.func @transform_4(%arg0: i32, %arg1: i32, %arg2: i32) -> (i32, i32, i32) {
    %c0_i32 = arith.constant 0 : i32
    %c0_i32_0 = arith.constant 0 : i32
    return %arg0, %c0_i32, %arg2 : i32, i32, i32
  }
  func.func @transform_5(%arg0: i32, %arg1: i32, %arg2: i32) -> (i32, i32, i32) {
    %c0_i32 = arith.constant 0 : i32
    %c0_i32_0 = arith.constant 0 : i32
    return %arg0, %c0_i32, %arg1 : i32, i32, i32
  }
}

</mosaic_0001>

<bundles_post_ra>
// kernel: tpu_custom_call.1
= control target key start
LH: loop header
LB: loop body
LE: loop exit
PB: predicated region body
PF: predicated region fallthrough
CT: control target
= control target key end

     0   :  { %10 = vsyncpa [#allocation5], 0  ;;  %s1190_s0 = inlined_call_operand.vmem [shape: f32[8], index: 0, kind: input, shape index: {}]   ;;  %s1191_s1 = inlined_call_operand.vmem [shape: f32[4], index: 1, kind: input, shape index: {}]   ;;  %s1192_s2 = inlined_call_operand.vmem [shape: f32[2,1,128], index: 2, kind: input, shape index: {}]   ;;  %s1193_s3 = inlined_call_operand.vmem [shape: f32[2,128,1], index: 3, kind: input, shape index: {}]   ;;  %s1194_s4 = inlined_call_operand.vmem [shape: f32[2,2,128], index: 4, kind: input, shape index: {}]   ;;  %s1195_s5 = inlined_call_operand.hbm [shape: f32[2,1,128], index: 5, kind: output, shape index: {}]  }
   0x1   :  { %11 = vsyncpa [#allocation7], 0 }
   0x2   :  { %12 = vsyncpa [#allocation4], 0 }
   0x3   :  { %14 = vsyncpa [#allocation4 + $0x1], 0  ;;  %s1007_s18 = smov 0   ;;  %s1009_s19 = smov 0  }
   0x4   :  { %s1011_s20 = smov 0   ;;  %s1013_s21 = smov 0  }
   0x5   :  { %s1015_s22 = smov 0   ;;  %s1017_s23 = smov 0  }
   0x6 LB: > { %s721_s24 = sadd.s32 4294967295, %s971_s23   ;;  %s722_s25 = sadd.s32 4294967294, %s971_s23   ;;  %s971_s23 = sphi %s1017_s23, %s20_s23   ;;  %s967_s22 = sphi %s1015_s22, %s1203_s22   ;;  %s963_s21 = sphi %s1013_s21, %s1202_s21   ;;  %s959_s20 = sphi %s1011_s20, %s1201_s20   ;;  %s955_s19 = sphi %s1009_s19, %s1200_s19   ;;  %s951_s18 = sphi %s1007_s18, %s1199_s18  }
   0x7   : > { %s39_s26 = sadd.s32 1, %s967_s22  ;;  %s174_s27 = sadd.s32 1, %s959_s20 }
   0x8   : > { %p41_p0 = scmp.ge.s32.totalorder %s39_s26, 2  ;;  %p184_p1 = scmp.ne.s32.totalorder %s959_s20, %s955_s19 }
   0x9   : > { %p185_p2 = scmp.eq.s32.totalorder %s721_s24, 1  ;;  %p190_p3 = scmp.ne.s32.totalorder %s955_s19, %s951_s18 }
   0xa   : > { %s1205_s26 = smov (%p41_p0, %s39_s26), 0  ;;  %p191_p5 = scmp.eq.s32.totalorder %s722_s25, 1 }
   0xb   : > { %p1047_p4 = por %p185_p2, %p184_p1  ;;  %s169_s29 = ssub.s32 %s967_s22, %s1205_s26 }
   0xc   : > { %p723_p6 = scmp.ge.s32.totalorder %s971_s23, 1  ;;  %p172_p7 = scmp.eq.s32.totalorder %s169_s29, 0 }
   0xd   : > { %p1054_p8 = por %p191_p5, %p190_p3  ;;  %p198_p9 = scmp.lt.s32.totalorder %s971_s23, 3 }
   0xe   : > { %s1060_s6 = scalar_select %p172_p7, %s959_s20, %s174_s27  }
   0xf   : > { %p199_p10 = pnand %p723_p6, %p198_p9  ;;  %p1062_p11 = scmp.eq.s32.totalorder %s721_s24, 0 }
  0x10   : > { %s210_s10 = sshll.u32 %s1190_s0, 4  ;;  %s220_s13 = sshll.u32 %s1191_s1, 4  ;;  %s211_s10 = int_to_ptr.vmem [resolvable:$true] %s210_s10  ;;  %s221_s13 = int_to_ptr.vmem [resolvable:$true] %s220_s13 }
  0x11   : > { %p750_p12 = pneg %p199_p10  ;;  %s973_s14 = smov [#allocation3]  }
  0x12   : > { %s974_s15 = smov [#allocation6]   ;;  %265 = sbr.rel (%p199_p10) target bundleno = 368 (0x170), region = 40 }
  0x13   : > { %p751_p13 = pnand %p1062_p11, %p750_p12 }
  0x15   : > { %753 = dma.vmem_to_smem (!%p751_p13), %s211_s10, 16, %s973_s14, [#allocation5]  }
  0x16   : > { %756 = dma.vmem_to_smem (!%p751_p13), %s221_s13, 16, %s974_s15, [#allocation7]  }
  0x17   : > { %938 = dma.done.wait (%p1062_p11), [#allocation5], 16  }
  0x18   : > { %940 = vsyncadd (%p1062_p11), [#allocation5], 4294967280 }
  0x19   : > { %942 = dma.done.wait (%p1062_p11), [#allocation7], 16  }
  0x1a   : > { %944 = vsyncadd (%p1062_p11), [#allocation7], 4294967280 }
  0x1b   : > { %277 = sfence }
  0x1c   : > { %p316_p0 = scmp.lt.s32.totalorder %s963_s21, 1  ;;  %v975_v0 = vmov 0   ;;  %s344_s29 = sld [smem:[#allocation3]] }
  0x1d   : > { %820 = vset.pattern.permute.xlu2 %v975_v0  ;;  %819 = vset.pattern.permute.xlu1 %v975_v0  ;;  %s734_s7 = sshll.u32 %s963_s21, 1  ;;  %s733_s8 = sld [smem:[#allocation3 + $0x3]] }
  0x1e   : > { %818 = vset.pattern.permute.xlu0 %v975_v0  ;;  %s1084_s16 = scalar_select %p316_p0, %s963_s21, 1 }
  0x1f   : > { %s348_s9 = sadd.s32 1, %s734_s7  ;;  %s347_s13 = sld [smem:[#allocation6 + %s734_s7]] }
  0x20   : > { %s739_s17 = sshll.u32 %s1084_s16, 7  ;;  %s321_s12 = scalar_lea.vmem %s1192_s2, %s1084_s16 }
  0x21   : > { %s1090_s27 = scalar_lea.vmem %s1193_s3, %s739_s17  ;;  %s349_s14 = sld [smem:[#allocation6 + %s348_s9]]  ;;  %v350_v18 = vld [vmem:[%s321_s12] sm:$0x1] }
  0x22   : > { %v374_v1 = vld [vmem:[%s1090_s27 + $0x70] sm:$0xff]  ;;  %v372_v2 = vld [vmem:[%s1090_s27 + $0x60] sm:$0xff]  ;;  %v375_v4 = vld [vmem:[%s1090_s27 + $0x78] sm:$0xff]  ;;  %v351_v17 = vstv %s344_s29  ;;  %s732_s15 = sshll.u32 %s1084_s16, 1  ;;  %s735_s16 = sld [smem:[#allocation3 + $0x6]] }
  0x23   : > { %448 = vperm.xlu0 %818, %v374_v1   ;;  %438 = vperm.xlu1 %819, %v372_v2   ;;  %v370_v3 = vld [vmem:[%s1090_s27 + $0x50] sm:$0xff]  ;;  %v373_v5 = vld [vmem:[%s1090_s27 + $0x68] sm:$0xff]  ;;  %v371_v6 = vld [vmem:[%s1090_s27 + $0x58] sm:$0xff]  ;;  %v352_v19 = vmul.f32 %v351_v17, %v350_v18  ;;  %v353_v20 = vstv %s733_s8  ;;  %s338_s25 = scalar_lea.vmem %s1194_s4, %s732_s15  ;;  %s314_s29 = sand.u32 1, %s955_s19  }
  0x24   : > { %428 = vperm.xlu2 %820, %v370_v3   ;;  %v369_v7 = vld [vmem:[%s1090_s27 + $0x48] sm:$0xff]  ;;  %v368_v8 = vld [vmem:[%s1090_s27 + $0x40] sm:$0xff]  ;;  %v366_v9 = vld [vmem:[%s1090_s27 + $0x30] sm:$0xff]  ;;  %s595_s9 = scalar_lea.hbm %s1195_s5, %s963_s21  ;;  %s315_s10 = scalar_lea.vmem [#allocation8], %s314_s29 }
  0x25   : > { %v367_v10 = vld [vmem:[%s1090_s27 + $0x38] sm:$0xff]  ;;  %v364_v11 = vld [vmem:[%s1090_s27 + $0x20] sm:$0xff]  ;;  %v365_v12 = vld [vmem:[%s1090_s27 + $0x28] sm:$0xff]  ;;  %v354_v21 = vadd.f32 %v353_v20, %v352_v19  ;;  %v355_v22 = vstv %s347_s13  ;;  %s597_s11 = sshll.u32 %s315_s10, 4  ;;  %s599_s12 = sshll.u32 %s595_s9, 4  ;;  %s598_s11 = int_to_ptr.vmem [resolvable:$true] %s597_s11  ;;  %s600_s12 = int_to_ptr.hbm [resolvable:$true] %s599_s12 }
  0x26   : > { %v363_v13 = vld [vmem:[%s1090_s27 + $0x18] sm:$0xff]  ;;  %v362_v14 = vld [vmem:[%s1090_s27 + $0x10] sm:$0xff]  ;;  %v360_v15 = vld [vmem:[%s1090_s27] sm:$0xff]  ;;  %s586_s13 = scalar_lea.sflag [#allocation4], %s314_s29  ;;  %s905_s24 = scalar_lea.hbm %s1195_s5, 2 }
  0x27   : > { %v361_v16 = vld [vmem:[%s1090_s27 + $0x8] sm:$0xff]  ;;  %v357_v23 = vstv %s349_s14  ;;  %v356_v25 = vmul.f32 %v355_v22, %v354_v21  ;;  %v1113_v28 = vperm.slane %v354_v21, 0  ;;  %s736_s27 = sld [smem:[#allocation3 + $0x7]]  ;;  %s899_s14 = sshra.s32 %s600_s12, 4  ;;  %s900_s14 = int_to_ptr.hbm [resolvable:$true] %s899_s14 }
  0x28   : > { %v358_v26 = vmul.f32 %v357_v23, %v354_v21  ;;  %s901_s15 = scalar_lea.hbm %s900_s14, 1  ;;  %p906_p5 = scmp.lt.s32.totalorder %s900_s14, %s1195_s5 }
  0x29   : > { %p902_p1 = scmp.ne.s32.totalorder %s900_s14, %s901_s15  ;;  %p907_p6 = scmp.lt.s32.totalorder %s905_s24, %s901_s15 }
  0x2a   : > { %v359_v27 = vmax.f32 %v356_v25, %v358_v26 }
  0x2b   : > { %453 = vperm.xlu0 %818, %v375_v4   ;;  %443 = vperm.xlu1 %819, %v373_v5   ;;  %p903_p2 = pnand %p902_p1, %p1047_p4  ;;  %p908_p7 = por %p907_p6, %p906_p5 }
  0x2c   : > { %433 = vperm.xlu2 %820, %v371_v6   ;;  %v1115_v30 = vperm.slane %v359_v27, 0 }
  0x2d   : > { %p904_p3 = pneg %p903_p2 }
  0x2f   : > { %p909_p9 = pnand %p908_p7, %p904_p3 }
  0x33   : > { %423 = vperm.xlu1 %819, %v369_v7   ;;  %418 = vperm.xlu0 %818, %v368_v8  }
  0x34   : > { %408 = vperm.xlu2 %820, %v366_v9  }
  0x3b   : > { %413 = vperm.xlu0 %818, %v367_v10   ;;  %398 = vperm.xlu1 %819, %v364_v11  }
  0x3c   : > { %403 = vperm.xlu2 %820, %v365_v12  }
  0x43   : > { %393 = vperm.xlu1 %819, %v363_v13   ;;  %388 = vperm.xlu0 %818, %v362_v14  }
  0x44   : > { %378 = vperm.xlu2 %820, %v360_v15  }
  0x4b   : > { %383 = vperm.xlu0 %818, %v361_v16  }
  0x7e   : > { %v429_v24 = vpop.permute.xlu2 %428 }
  0x7f   : > { %v469_v36 = vmul.f32 %v1113_v28, %v429_v24 }
  0x81   : > { %v488_v45 = vsub.f32 %v469_v36, %v1115_v30 }
  0x83   : > { %v504_v53 = vmin.f32 %v488_v45, 0.0 }
  0x85   : > { %v530_v63 = vmul.f32 1.442695, %v504_v53 }
  0x86   : > { %v434_v29 = vpop.permute.xlu2 %433 }
  0x87   : > { %v470_v37 = vmul.f32 %v1113_v28, %v434_v29 }
  0x89   : > { %v489_v46 = vsub.f32 %v470_v37, %v1115_v30 }
  0x8b   : > { %v505_v54 = vmin.f32 %v489_v46, 0.0 }
  0x8d   : > { %v532_v0 = vmul.f32 1.442695, %v505_v54 }
  0x8e   : > { %v409_v41 = vpop.permute.xlu2 %408 }
  0x8f   : > { %v465_v57 = vmul.f32 %v1113_v28, %v409_v41 }
  0x91   : > { %v484_v4 = vsub.f32 %v465_v57, %v1115_v30 }
  0x93   : > { %v500_v12 = vmin.f32 %v484_v4, 0.0 }
  0x95   : > { %v449_v31 = vpop.permute.xlu0 %448  ;;  %v439_v32 = vpop.permute.xlu1 %438  ;;  %v522_v24 = vmul.f32 1.442695, %v500_v12 }
  0x96   : > { %v473_v33 = vmul.f32 %v1113_v28, %v449_v31  ;;  %v471_v35 = vmul.f32 %v1113_v28, %v439_v32  ;;  %v404_v1 = vpop.permute.xlu2 %403 }
  0x97   : > { %v464_v5 = vmul.f32 %v1113_v28, %v404_v1 }
  0x98   : > { %v492_v34 = vsub.f32 %v473_v33, %v1115_v30  ;;  %v490_v42 = vsub.f32 %v471_v35, %v1115_v30  ;;  %v976_v33 = vmov 0.0  }
  0x99   : > { %v483_v17 = vsub.f32 %v464_v5, %v1115_v30  ;;  %343 = vst [vmem:[#allocation2] sm:$0x3] %v976_v33  ;;  %v543_v5 = vld [vmem:[%s338_s25] sm:$0x3] }
  0x9a   : > { %v508_v38 = vmin.f32 %v492_v34, 0.0  ;;  %v506_v50 = vmin.f32 %v490_v42, 0.0 }
  0x9b   : > { %v499_v27 = vmin.f32 %v483_v17, 0.0 }
  0x9c   : > { %v538_v49 = vmul.f32 1.442695, %v508_v38  ;;  %v534_v60 = vmul.f32 1.442695, %v506_v50 }
  0x9d   : > { %v454_v39 = vpop.permute.xlu0 %453  ;;  %v444_v40 = vpop.permute.xlu1 %443  ;;  %v520_v42 = vmul.f32 1.442695, %v499_v27 }
  0x9e   : > { %v474_v43 = vmul.f32 %v1113_v28, %v454_v39  ;;  %v472_v44 = vmul.f32 %v1113_v28, %v444_v40  ;;  %821 = vpow2.f32 %v538_v49  ;;  %v379_v29 = vpop.permute.xlu2 %378 }
  0x9f   : > { %v459_v37 = vmul.f32 %v1113_v28, %v379_v29 }
  0xa0   : > { %v493_v47 = vsub.f32 %v474_v43, %v1115_v30  ;;  %v491_v48 = vsub.f32 %v472_v44, %v1115_v30 }
  0xa2   : > { %v509_v51 = vmin.f32 %v493_v47, 0.0  ;;  %v507_v52 = vmin.f32 %v491_v48, 0.0  ;;  %v478_v47 = vsub.f32 %v459_v37, %v1115_v30 }
  0xa4   : > { %v540_v55 = vmul.f32 1.442695, %v509_v51  ;;  %v536_v56 = vmul.f32 1.442695, %v507_v52  ;;  %v822_v8 = vpop.eup %821 }
  0xa5   : > { %v424_v58 = vpop.permute.xlu1 %423  ;;  %v419_v59 = vpop.permute.xlu0 %418 }
  0xa6   : > { %823 = vpow2.f32 %v540_v55  ;;  %v468_v61 = vmul.f32 %v1113_v28, %v424_v58  ;;  %v467_v62 = vmul.f32 %v1113_v28, %v419_v59  ;;  %v494_v55 = vmin.f32 %v478_v47, 0.0 }
  0xa7   : > { %825 = vpow2.f32 %v536_v56 }
  0xa8   : > { %v487_v2 = vsub.f32 %v468_v61, %v1115_v30  ;;  %v486_v3 = vsub.f32 %v467_v62, %v1115_v30  ;;  %827 = vpow2.f32 %v534_v60  ;;  %v510_v62 = vmul.f32 1.442695, %v494_v55 }
  0xa9   : > { %829 = vpow2.f32 %v530_v63 }
  0xaa   : > { %v503_v6 = vmin.f32 %v487_v2, 0.0  ;;  %v502_v7 = vmin.f32 %v486_v3, 0.0  ;;  %831 = vpow2.f32 %v532_v0 }
  0xac   : > { %v824_v9 = vpop.eup %823  ;;  %v528_v10 = vmul.f32 1.442695, %v503_v6  ;;  %v526_v11 = vmul.f32 1.442695, %v502_v7  ;;  %v544_v7 = vpack.c.bf16 %v543_v5, %v543_v5 }
  0xad   : > { %v414_v13 = vpop.permute.xlu0 %413  ;;  %v399_v14 = vpop.permute.xlu1 %398  ;;  %v552_v15 = vpack.c.bf16 %v824_v9, %v822_v8  ;;  %v542_v8 = vld [vmem:[#allocation2] sm:$0x3] }
  0xae   : > { %v826_v16 = vpop.eup %825  ;;  %v466_v18 = vmul.f32 %v1113_v28, %v414_v13  ;;  %v463_v19 = vmul.f32 %v1113_v28, %v399_v14  ;;  %833 = vpow2.f32 %v528_v10 }
  0xaf   : > { %553 = vmatpush.bf16.msra.mxu0 %v552_v15  ;;  %v828_v20 = vpop.eup %827  ;;  %835 = vpow2.f32 %v526_v11 }
  0xb0   : > { %v485_v21 = vsub.f32 %v466_v18, %v1115_v30  ;;  %v482_v22 = vsub.f32 %v463_v19, %v1115_v30  ;;  %v830_v23 = vpop.eup %829  ;;  %v551_v25 = vpack.c.bf16 %v826_v16, %v828_v20  ;;  %837 = vpow2.f32 %v522_v24 }
  0xb1   : > { %v832_v26 = vpop.eup %831  ;;  %v580_v18 = vstv %s735_s16  ;;  %v582_v20 = vstv %s736_s27 }
  0xb2   : > { %v501_v31 = vmin.f32 %v485_v21, 0.0  ;;  %v498_v32 = vmin.f32 %v482_v22, 0.0  ;;  %v550_v40 = vpack.c.bf16 %v832_v26, %v830_v23 }
  0xb3   : > { %554 = vmatpush.bf16.msra.mxu0 %v551_v25 }
  0xb4   : > { %v524_v34 = vmul.f32 1.442695, %v501_v31  ;;  %v518_v35 = vmul.f32 1.442695, %v498_v32  ;;  %v834_v36 = vpop.eup %833 }
  0xb5   : > { %v394_v38 = vpop.permute.xlu1 %393  ;;  %v389_v39 = vpop.permute.xlu0 %388 }
  0xb6   : > { %v836_v41 = vpop.eup %835  ;;  %839 = vpow2.f32 %v524_v34  ;;  %v462_v43 = vmul.f32 %v1113_v28, %v394_v38  ;;  %v461_v44 = vmul.f32 %v1113_v28, %v389_v39 }
  0xb7   : > { %555 = vmatpush.bf16.msra.mxu0 %v550_v40  ;;  %841 = vpow2.f32 %v518_v35  ;;  %v549_v48 = vpack.c.bf16 %v834_v36, %v836_v41  ;;  %v838_v51 = vpop.eup %837 }
  0xb8   : > { %v481_v45 = vsub.f32 %v462_v43, %v1115_v30  ;;  %v480_v46 = vsub.f32 %v461_v44, %v1115_v30  ;;  %843 = vpow2.f32 %v520_v42 }
  0xba   : > { %v497_v49 = vmin.f32 %v481_v45, 0.0  ;;  %v496_v50 = vmin.f32 %v480_v46, 0.0 }
  0xbb   : > { %556 = vmatpush.bf16.msra.mxu0 %v549_v48 }
  0xbc   : > { %v840_v52 = vpop.eup %839  ;;  %v516_v53 = vmul.f32 1.442695, %v497_v49  ;;  %v514_v54 = vmul.f32 1.442695, %v496_v50 }
  0xbd   : > { %v384_v56 = vpop.permute.xlu0 %383  ;;  %v548_v57 = vpack.c.bf16 %v840_v52, %v838_v51  ;;  %v842_v58 = vpop.eup %841 }
  0xbe   : > { %845 = vpow2.f32 %v516_v53  ;;  %v460_v59 = vmul.f32 %v1113_v28, %v384_v56  ;;  %v844_v60 = vpop.eup %843 }
  0xbf   : > { %847 = vpow2.f32 %v514_v54  ;;  %557 = vmatpush.bf16.msra.mxu0 %v548_v57  ;;  %v547_v63 = vpack.c.bf16 %v844_v60, %v842_v58 }
  0xc0   : > { %v479_v61 = vsub.f32 %v460_v59, %v1115_v30  ;;  %849 = vpow2.f32 %v510_v62 }
  0xc2   : > { %v495_v0 = vmin.f32 %v479_v61, 0.0 }
  0xc3   : > { %558 = vmatpush.bf16.msra.mxu0 %v547_v63 }
  0xc4   : > { %v846_v1 = vpop.eup %845  ;;  %v512_v2 = vmul.f32 1.442695, %v495_v0 }
  0xc5   : > { %v848_v3 = vpop.eup %847 }
  0xc6   : > { %851 = vpow2.f32 %v512_v2  ;;  %v546_v4 = vpack.c.bf16 %v846_v1, %v848_v3  ;;  %v850_v28 = vpop.eup %849 }
  0xc8   : > { %559 = vmatpush.bf16.msra.mxu0 %v546_v4 }
  0xcc   : > { %v852_v6 = vpop.eup %851 }
  0xcd   : > { %v545_v30 = vpack.c.bf16 %v852_v6, %v850_v28 }
  0xcf   : > { %560 = vmatpush.bf16.msra.mxu0 %v545_v30 }
  0xd2   : > { %561 = vmatmul.bf16.vlgmr.msra.gmra.mxu0 %v544_v7 }
 0x14f   : > { %v562_v9 = vpop.f32.mrf.mxu0 }
 0x150   : > { %v566_v10 = vadd.f32 %v562_v9, %v542_v8 }
 0x152   : > { %567 = vst [vmem:[#allocation2] sm:$0x3] %v566_v10 }
 0x157   : > { %v564_v11 = vpop.f32.mrf.mxu0 }
 0x159   : > { %v572_v12 = vld [vmem:[#allocation2 + $0x1] sm:$0x1]  ;;  %v571_v17 = vld [vmem:[#allocation2] sm:$0x1] }
 0x15a   : > { %853 = vrcp.f32 %v572_v12 }
 0x160   : > { %v854_v13 = vpop.eup %853 }
 0x161   : > { %v574_v14 = vmul.f32 %v854_v13, %v572_v12 }
 0x163   : > { %v575_v15 = vsub.f32 2.0, %v574_v14 }
 0x165   : > { %v576_v16 = vmul.f32 %v854_v13, %v575_v15 }
 0x167   : > { %v579_v19 = vmul.f32 %v576_v16, %v571_v17 }
 0x169   : > { %v581_v21 = vmul.f32 %v580_v18, %v579_v19 }
 0x16b   : > { %v583_v22 = vadd.f32 %v582_v20, %v581_v21 }
 0x16d   : > { %584 = vst [vmem:[%s315_s10] sm:$0x1] %v583_v22 }
 0x16e   : > { %912 = shalt.err (!%p909_p9)
}
 0x16f   : > { %748 = dma.vmem_to_hbm [thread:$0]  (%p1047_p4), %s598_s11, 16, %s600_s12, %s586_s13  }
 0x170 PF: > { %p765_p10 = scmp.ge.s32.totalorder %s971_s23, 2  ;;  %s611_s27 = sand.u32 1, %s951_s18  }
 0x171   : > { %s612_s29 = scalar_lea.sflag [#allocation4], %s611_s27 }
 0x172   : > { %p758_p11 = pnand %p765_p10, %p1054_p8 }
 0x174   : > { %p759_p12 = pneg %p758_p11 }
 0x176   : > { %946 = dma.done.wait (%p759_p12), %s612_s29, 16  }
 0x177   : > { %948 = vsyncadd (%p759_p12), %s612_s29, 4294967280  ;;  %s20_s23 = sadd.s32 1, %s971_s23   ;;  %s1199_s18 = smov %s955_s19 }
 0x178   : > { %p17_p13 = scmp.ge.s32.totalorder %s20_s23, 4   ;;  %s1200_s19 = smov %s959_s20 }
 0x179   : > { %s1201_s20 = smov %s1060_s6  ;;  %s1202_s21 = smov %s967_s22 }
 0x17a   : > { %s1203_s22 = smov %s1205_s26  ;;  %19 = sbr.rel (!%p17_p13) target bundleno = 6 (0x6), region = 98 }
 0x17f   :  { %617 = vsyncpa [#allocation4], 1 }
 0x180   :  { %619 = vsyncpa [#allocation4 + $0x1], 1 }
 0x181   :  { %620 = vsyncpa [#allocation5], 1 }
 0x182   :  { %622 = vsyncpa [#allocation5 + $0x1], 1 }
 0x183   :  { %623 = vsyncpa [#allocation7], 1 }

</bundles_post_ra>
